<compile_context>
chip_gen: v7x
topology: tpu7x:2x2x1
jax: 0.10.0
libtpu: 0.0.40
codegen_flags: <defaults>
</compile_context>

<pallas_src>
import jax
import jax.numpy as jnp
from jax.experimental import pallas as pl
from jax.experimental.pallas import tpu as pltpu


# ---------------------------------------------------------------------------
# Kernel
# ---------------------------------------------------------------------------
def decoder_kernel(x_ref, w1_ref, b1_ref, w2_ref, b2_ref, w3_ref, b3_ref, o_ref):
    """Fused 3-layer MLP decoder: (matmul + bias + LeakyReLU(0.2)) x2, then sigmoid."""
    w_dtype = w1_ref.dtype
    # In-kernel cast (no-op for f32 path); wrapper always passes f32 x.
    x = x_ref[...].astype(w_dtype)

    # FC_hidden + LeakyReLU(0.2)   (f32 accumulation on the MXU)
    h = jnp.dot(x, w1_ref[...], preferred_element_type=jnp.float32)
    h = h + b1_ref[...]
    h = jnp.maximum(h, 0.2 * h)  # LeakyReLU(0.2): identical to where(h>=0,h,0.2h)

    # FC_hidden2 + LeakyReLU(0.2)
    h = jnp.dot(h.astype(w_dtype), w2_ref[...], preferred_element_type=jnp.float32)
    h = h + b2_ref[...]
    h = jnp.maximum(h, 0.2 * h)

    # FC_output + sigmoid (sigmoid runs on the EUP slot — effectively free here)
    y = jnp.dot(h.astype(w_dtype), w3_ref[...], preferred_element_type=jnp.float32)
    y = y + b3_ref[...]
    o_ref[...] = jax.nn.sigmoid(y).astype(o_ref.dtype)


# ---------------------------------------------------------------------------
# Helpers
# ---------------------------------------------------------------------------
def _round_up(n, m):
    return ((n + m - 1) // m) * m


def _cdiv(a, b):
    return -(-a // b)


def _tpu_vmem_limit_bytes():
    """Use ~75% of physical VMEM if discoverable, else a v7x-safe 48 MiB."""
    try:
        cap = pltpu.get_tpu_info().vmem_capacity_bytes
        return int(cap * 3 // 4)
    except Exception:
        return 48 * 1024 * 1024


def _num_tensorcores_per_chip():
    """Best-effort: v7x has 2 TensorCores/chip; v5e/v6e have 1."""
    try:
        kind = jax.devices()[0].device_kind.lower()
        if "v7" in kind:
            return 2
    except Exception:
        pass
    return 1


def _const_spec(shape, index_map):
    """Constant-block spec, single-buffered (weights/biases never change)."""
    try:
        return pl.BlockSpec(shape, index_map, pipeline_mode=pl.Buffered(1))
    except (TypeError, AttributeError):
        return pl.BlockSpec(shape, index_map)


# ---------------------------------------------------------------------------
# One-time parameter preparation (padding + casting hoisted out of forward)
# ---------------------------------------------------------------------------
def prepare_params(params, *, compute_dtype=jnp.float32, lane_multiple=None):
    """Pad/cast decoder weights once; reuse the result across forward calls.

    compute_dtype=jnp.bfloat16 stores weights in bf16 (full-rate MXU on v6e/v7x,
    pure HBM-bandwidth win on v5e) while accumulation and biases stay f32.
    NOTE: int8 weights would lower on v5e/v6e MXUs but NOT on v7x (fp8 only);
    bf16 (or fp8 on v7x) is the portable sub-f32 option.
    """
    latent_dim, hidden_dim = params["W1"].shape
    output_dim = params["W3"].shape[1]

    if lane_multiple is None:
        # v6e/v7x MXUs are 256-wide: pad the N dims to 256 in the bf16 regime.
        lane_multiple = 128 if compute_dtype == jnp.float32 else 256

    Lp = _round_up(latent_dim, 128)  # K dim of layer 1: 128 granularity suffices
    Hp = _round_up(hidden_dim, lane_multiple)
    Op = _round_up(output_dim, lane_multiple)

    def pad2(a, rows, cols):
        return jnp.pad(a, ((0, rows - a.shape[0]), (0, cols - a.shape[1])))

    prepared = {
        "W1": pad2(params["W1"], Lp, Hp).astype(compute_dtype),
        "W2": pad2(params["W2"], Hp, Hp).astype(compute_dtype),
        "W3": pad2(params["W3"], Hp, Op).astype(compute_dtype),
        "b1": jnp.pad(params["b1"], (0, Hp - hidden_dim)).reshape(1, Hp).astype(jnp.float32),
        "b2": jnp.pad(params["b2"], (0, Hp - hidden_dim)).reshape(1, Hp).astype(jnp.float32),
        "b3": jnp.pad(params["b3"], (0, Op - output_dim)).reshape(1, Op).astype(jnp.float32),
        "dims": (latent_dim, hidden_dim, output_dim),
        "padded_dims": (Lp, Hp, Op),
        "compute_dtype": compute_dtype,
    }
    # Materialize now so this cost is paid exactly once.
    for k in ("W1", "W2", "W3", "b1", "b2", "b3"):
        prepared[k] = jax.block_until_ready(prepared[k])
    return prepared


# ---------------------------------------------------------------------------
# Forward
# ---------------------------------------------------------------------------
def decoder_forward(x, prepared, *, batch_tile=512, out_dtype=jnp.float32,
                    vmem_limit_bytes=None):
    """x: (B, latent_dim) f32.  prepared: output of prepare_params()."""
    B, latent_dim = x.shape
    lat, hid, outd = prepared["dims"]
    assert latent_dim == lat, "input latent dim does not match prepared params"
    Lp, Hp, Op = prepared["padded_dims"]
    compute_dtype = prepared["compute_dtype"]

    w_bytes = jnp.dtype(compute_dtype).itemsize
    x_bytes = x.dtype.itemsize
    o_bytes = jnp.dtype(out_dtype).itemsize

    if vmem_limit_bytes is None:
        vmem_limit_bytes = _tpu_vmem_limit_bytes()

    # --- VMEM budget: resident single-buffered weights + double-buffered x/out
    #     tiles + f32 intermediate activation slabs. Shrink batch tile to fit.
    weight_bytes = (Lp * Hp + Hp * Hp + Hp * Op) * w_bytes + (2 * Hp + Op) * 4

    def vmem_est(tile):
        io = 2 * tile * (Lp * x_bytes + Op * o_bytes)  # pipeline double-buffers I/O
        act = 2 * tile * Hp * 4                        # f32 h / y slabs
        return weight_bytes + io + act

    batch_tile = max(8, _round_up(batch_tile, 8))
    while batch_tile > 8 and vmem_est(batch_tile) > int(vmem_limit_bytes * 0.8):
        batch_tile = max(8, _round_up(batch_tile // 2, 8))
    # TODO(synk): for very large hidden dims (weights alone ~> VMEM/2) tile the
    # hidden/output (N) dimension as an extra grid axis instead of resident weights.

    # --- Balanced batch tiling: padding waste < 8 rows per step. On v7x make the
    #     step count a multiple of the TC count so "parallel" shards across cores.
    steps = _cdiv(B, batch_tile)
    num_tc = _num_tensorcores_per_chip()
    if num_tc > 1 and B >= num_tc * 8:
        steps = _round_up(max(steps, num_tc), num_tc)
    tile = _round_up(_cdiv(B, steps), 8)
    Bp = steps * tile
    grid = (steps,)

    if Bp != B or Lp != latent_dim:
        xp = jnp.pad(x, ((0, Bp - B), (0, Lp - latent_dim)))
    else:
        xp = x

    full = lambda i: (0, 0)  # weights/biases: constant block, stay VMEM-resident

    flops = 2 * Bp * (Lp * Hp + Hp * Hp + Hp * Op)
    bytes_accessed = (
        Bp * Lp * x_bytes                              # input
        + (Lp * Hp + Hp * Hp + Hp * Op) * w_bytes      # weights
        + (2 * Hp + Op) * 4                            # biases
        + Bp * Op * o_bytes                            # output
    )
    cost = pl.CostEstimate(
        flops=flops, transcendentals=Bp * Op, bytes_accessed=bytes_accessed
    )

    out = pl.pallas_call(
        decoder_kernel,
        out_shape=jax.ShapeDtypeStruct((Bp, Op), out_dtype),
        grid_spec=pltpu.PrefetchScalarGridSpec(
            num_scalar_prefetch=0,
            grid=grid,
            in_specs=[
                pl.BlockSpec((tile, Lp), lambda i: (i, 0)),  # x tile (double-buffered)
                _const_spec((Lp, Hp), full),                 # W1
                _const_spec((1, Hp), full),                  # b1
                _const_spec((Hp, Hp), full),                 # W2
                _const_spec((1, Hp), full),                  # b2
                _const_spec((Hp, Op), full),                 # W3
                _const_spec((1, Op), full),                  # b3
            ],
            out_specs=pl.BlockSpec((tile, Op), lambda i: (i, 0)),
        ),
        compiler_params=pltpu.CompilerParams(
            dimension_semantics=("parallel",),  # multi-step grids shard across v7x TCs
            vmem_limit_bytes=int(vmem_limit_bytes),
        ),
        cost_estimate=cost,
    )(xp, prepared["W1"], prepared["b1"], prepared["W2"], prepared["b2"],
      prepared["W3"], prepared["b3"])

    # Strip batch / lane padding.
    return out[:B, :outd]


# ---------------------------------------------------------------------------
# Reference + init
# ---------------------------------------------------------------------------
def init_params(key, latent_dim, hidden_dim, output_dim):
    """Deterministic synthetic init (PyTorch-like uniform fan-in scaling)."""
    ks = jax.random.split(key, 6)

    def lin(kw, kb, fan_in, fan_out):
        bound = 1.0 / jnp.sqrt(fan_in)
        W = jax.random.uniform(kw, (fan_in, fan_out), jnp.float32, -bound, bound)
        b = jax.random.uniform(kb, (fan_out,), jnp.float32, -bound, bound)
        return W, b

    W1, b1 = lin(ks[0], ks[1], latent_dim, hidden_dim)
    W2, b2 = lin(ks[2], ks[3], hidden_dim, hidden_dim)
    W3, b3 = lin(ks[4], ks[5], hidden_dim, output_dim)
    return {"W1": W1, "b1": b1, "W2": W2, "b2": b2, "W3": W3, "b3": b3}


def decoder_ref(x, params):
    """Pure-JAX reference matching torch semantics."""
    h = x @ params["W1"] + params["b1"]
    h = jnp.where(h >= 0, h, 0.2 * h)
    h = h @ params["W2"] + params["b2"]
    h = jnp.where(h >= 0, h, 0.2 * h)
    y = h @ params["W3"] + params["b3"]
    return jax.nn.sigmoid(y)


if __name__ == "__main__":
    # Small shapes exercising all padding paths:
    # batch not a multiple of 8, output not a multiple of 128.
    latent_dim, hidden_dim, output_dim = 16, 64, 100
    batch = 37

    key = jax.random.PRNGKey(0)
    kx, kp = jax.random.split(key)
    x = jax.random.normal(kx, (batch, latent_dim), jnp.float32)
    params = init_params(kp, latent_dim, hidden_dim, output_dim)

    ref = decoder_ref(x, params)

    # f32 path (exact vs reference); padding/casting done once in prepare_params.
    prep_f32 = prepare_params(params)
    out = jax.block_until_ready(decoder_forward(x, prep_f32))
    assert out.shape == (batch, output_dim)
    assert jnp.allclose(out, ref, atol=1e-5, rtol=1e-5), "f32 mismatch vs reference"

    # bf16-weight fast path (f32 MXU accumulation; x cast in-kernel) — loose tolerance.
    prep_bf16 = prepare_params(params, compute_dtype=jnp.bfloat16)
    out_bf16 = jax.block_until_ready(decoder_forward(x, prep_bf16))
    assert out_bf16.shape == (batch, output_dim)
    assert jnp.allclose(out_bf16, ref, atol=2e-2), "bf16 mismatch vs reference"

    # Batch size that doesn't divide the tile — exercises balanced multi-step tiling.
    x2 = jax.random.normal(kx, (600, latent_dim), jnp.float32)
    out2 = jax.block_until_ready(decoder_forward(x2, prep_f32, batch_tile=256))
    assert out2.shape == (600, output_dim)
    assert jnp.allclose(out2, decoder_ref(x2, params), atol=1e-5, rtol=1e-5), \
        "multi-step mismatch vs reference"

    print("KERNEL_OK")
</pallas_src>

<mosaic_0001>
module attributes {stable_mosaic.version = 11 : i64} {
  func.func @decoder_kernel(%arg0: i32, %arg1: memref<40x128xf32, #tpu.memory_space<vmem>>, %arg2: memref<128x128xf32, #tpu.memory_space<vmem>>, %arg3: memref<1x128xf32, #tpu.memory_space<vmem>>, %arg4: memref<128x128xf32, #tpu.memory_space<vmem>>, %arg5: memref<1x128xf32, #tpu.memory_space<vmem>>, %arg6: memref<128x128xf32, #tpu.memory_space<vmem>>, %arg7: memref<1x128xf32, #tpu.memory_space<vmem>>, %arg8: memref<40x128xf32, #tpu.memory_space<vmem>>) attributes {dimension_semantics = [#tpu.dimension_semantics<parallel>], iteration_bounds = array<i64: 1>, scalar_prefetch = 0 : i64, scratch_operands = 0 : i64, tpu.core_type = #tpu.core_type<tc>, window_params = [{transform_indices = @transform_0, window_bounds = array<i64: 40, 128>}, {pipeline_mode = #tpu.pipeline_mode<synchronous>, transform_indices = @transform_1, window_bounds = array<i64: 128, 128>}, {pipeline_mode = #tpu.pipeline_mode<synchronous>, transform_indices = @transform_2, window_bounds = array<i64: 1, 128>}, {pipeline_mode = #tpu.pipeline_mode<synchronous>, transform_indices = @transform_3, window_bounds = array<i64: 128, 128>}, {pipeline_mode = #tpu.pipeline_mode<synchronous>, transform_indices = @transform_4, window_bounds = array<i64: 1, 128>}, {pipeline_mode = #tpu.pipeline_mode<synchronous>, transform_indices = @transform_5, window_bounds = array<i64: 128, 128>}, {pipeline_mode = #tpu.pipeline_mode<synchronous>, transform_indices = @transform_6, window_bounds = array<i64: 1, 128>}, {transform_indices = @transform_7, window_bounds = array<i64: 40, 128>}]} {
    %c0 = arith.constant 0 : index
    %c0_0 = arith.constant 0 : index
    %0 = vector.load %arg1[%c0, %c0_0] : memref<40x128xf32, #tpu.memory_space<vmem>>, vector<40x128xf32>
    %c0_1 = arith.constant 0 : index
    %c0_2 = arith.constant 0 : index
    %1 = vector.load %arg2[%c0_1, %c0_2] : memref<128x128xf32, #tpu.memory_space<vmem>>, vector<128x128xf32>
    %cst = arith.constant dense<0.000000e+00> : vector<40x128xf32>
    %2 = tpu.matmul %0, %1, %cst {dimension_numbers = #tpu.dot_dimension_numbers<[1], [0], [0], [1], [0, 0, 1, 1], [], []>} : vector<40x128xf32>, vector<128x128xf32>, vector<40x128xf32> -> vector<40x128xf32>
    %c0_3 = arith.constant 0 : index
    %c0_4 = arith.constant 0 : index
    %3 = vector.load %arg3[%c0_3, %c0_4] : memref<1x128xf32, #tpu.memory_space<vmem>>, vector<1x128xf32>
    %4 = vector.broadcast %3 : vector<1x128xf32> to vector<40x128xf32>
    %5 = arith.addf %2, %4 : vector<40x128xf32>
    %cst_5 = arith.constant 2.000000e-01 : f32
    %6 = vector.broadcast %cst_5 : f32 to vector<40x128xf32>
    %7 = arith.mulf %6, %5 : vector<40x128xf32>
    %8 = arith.maximumf %5, %7 : vector<40x128xf32>
    %c0_6 = arith.constant 0 : index
    %c0_7 = arith.constant 0 : index
    %9 = vector.load %arg4[%c0_6, %c0_7] : memref<128x128xf32, #tpu.memory_space<vmem>>, vector<128x128xf32>
    %cst_8 = arith.constant dense<0.000000e+00> : vector<40x128xf32>
    %10 = tpu.matmul %8, %9, %cst_8 {dimension_numbers = #tpu.dot_dimension_numbers<[1], [0], [0], [1], [0, 0, 1, 1], [], []>} : vector<40x128xf32>, vector<128x128xf32>, vector<40x128xf32> -> vector<40x128xf32>
    %c0_9 = arith.constant 0 : index
    %c0_10 = arith.constant 0 : index
    %11 = vector.load %arg5[%c0_9, %c0_10] : memref<1x128xf32, #tpu.memory_space<vmem>>, vector<1x128xf32>
    %12 = vector.broadcast %11 : vector<1x128xf32> to vector<40x128xf32>
    %13 = arith.addf %10, %12 : vector<40x128xf32>
    %cst_11 = arith.constant 2.000000e-01 : f32
    %14 = vector.broadcast %cst_11 : f32 to vector<40x128xf32>
    %15 = arith.mulf %14, %13 : vector<40x128xf32>
    %16 = arith.maximumf %13, %15 : vector<40x128xf32>
    %c0_12 = arith.constant 0 : index
    %c0_13 = arith.constant 0 : index
    %17 = vector.load %arg6[%c0_12, %c0_13] : memref<128x128xf32, #tpu.memory_space<vmem>>, vector<128x128xf32>
    %cst_14 = arith.constant dense<0.000000e+00> : vector<40x128xf32>
    %18 = tpu.matmul %16, %17, %cst_14 {dimension_numbers = #tpu.dot_dimension_numbers<[1], [0], [0], [1], [0, 0, 1, 1], [], []>} : vector<40x128xf32>, vector<128x128xf32>, vector<40x128xf32> -> vector<40x128xf32>
    %c0_15 = arith.constant 0 : index
    %c0_16 = arith.constant 0 : index
    %19 = vector.load %arg7[%c0_15, %c0_16] : memref<1x128xf32, #tpu.memory_space<vmem>>, vector<1x128xf32>
    %20 = vector.broadcast %19 : vector<1x128xf32> to vector<40x128xf32>
    %21 = arith.addf %18, %20 : vector<40x128xf32>
    %22 = arith.negf %21 : vector<40x128xf32>
    %23 = math.exp %22 : vector<40x128xf32>
    %cst_17 = arith.constant 1.000000e+00 : f32
    %24 = vector.broadcast %cst_17 : f32 to vector<40x128xf32>
    %25 = arith.addf %24, %23 : vector<40x128xf32>
    %26 = arith.divf %24, %25 : vector<40x128xf32>
    %c0_18 = arith.constant 0 : index
    %c0_19 = arith.constant 0 : index
    %27 = vector.load %arg8[%c0_18, %c0_19] : memref<40x128xf32, #tpu.memory_space<vmem>>, vector<40x128xf32>
    tpu.vector_store %arg8[%c0_18, %c0_19], %26 {strides = array<i32>} : memref<40x128xf32, #tpu.memory_space<vmem>>, vector<40x128xf32>,
    return
  }
  func.func @transform_0(%arg0: i32) -> (i32, i32) {
    %c0_i32 = arith.constant 0 : i32
    %c0_i32_0 = arith.constant 0 : i32
    return %arg0, %c0_i32 : i32, i32
  }
  func.func @transform_1(%arg0: i32) -> (i32, i32) {
    %c0_i32 = arith.constant 0 : i32
    %c0_i32_0 = arith.constant 0 : i32
    %c0_i32_1 = arith.constant 0 : i32
    return %c0_i32, %c0_i32_0 : i32, i32
  }
  func.func @transform_2(%arg0: i32) -> (i32, i32) {
    %c0_i32 = arith.constant 0 : i32
    %c0_i32_0 = arith.constant 0 : i32
    %c0_i32_1 = arith.constant 0 : i32
    return %c0_i32, %c0_i32_0 : i32, i32
  }
  func.func @transform_3(%arg0: i32) -> (i32, i32) {
    %c0_i32 = arith.constant 0 : i32
    %c0_i32_0 = arith.constant 0 : i32
    %c0_i32_1 = arith.constant 0 : i32
    return %c0_i32, %c0_i32_0 : i32, i32
  }
  func.func @transform_4(%arg0: i32) -> (i32, i32) {
    %c0_i32 = arith.constant 0 : i32
    %c0_i32_0 = arith.constant 0 : i32
    %c0_i32_1 = arith.constant 0 : i32
    return %c0_i32, %c0_i32_0 : i32, i32
  }
  func.func @transform_5(%arg0: i32) -> (i32, i32) {
    %c0_i32 = arith.constant 0 : i32
    %c0_i32_0 = arith.constant 0 : i32
    %c0_i32_1 = arith.constant 0 : i32
    return %c0_i32, %c0_i32_0 : i32, i32
  }
  func.func @transform_6(%arg0: i32) -> (i32, i32) {
    %c0_i32 = arith.constant 0 : i32
    %c0_i32_0 = arith.constant 0 : i32
    %c0_i32_1 = arith.constant 0 : i32
    return %c0_i32, %c0_i32_0 : i32, i32
  }
  func.func @transform_7(%arg0: i32) -> (i32, i32) {
    %c0_i32 = arith.constant 0 : i32
    %c0_i32_0 = arith.constant 0 : i32
    return %arg0, %c0_i32 : i32, i32
  }
}

</mosaic_0001>

<bundles_post_ra>
// kernel: tpu_custom_call.1
= control target key start
LH: loop header
LB: loop body
LE: loop exit
PB: predicated region body
PF: predicated region fallthrough
CT: control target
= control target key end

     0   :  { %12 = vsyncpa [#allocation3], 0  ;;  %s1158_s0 = inlined_call_operand.hbm [shape: f32[40,128], index: 0, kind: input, shape index: {}]   ;;  %s1159_s1 = inlined_call_operand.hbm [shape: f32[128,128], index: 1, kind: input, shape index: {}]   ;;  %s1160_s2 = inlined_call_operand.vmem [shape: f32[1,128], index: 2, kind: input, shape index: {}]   ;;  %s1161_s3 = inlined_call_operand.hbm [shape: f32[128,128], index: 3, kind: input, shape index: {}]   ;;  %s1162_s4 = inlined_call_operand.vmem [shape: f32[1,128], index: 4, kind: input, shape index: {}]   ;;  %s1163_s5 = inlined_call_operand.hbm [shape: f32[128,128], index: 5, kind: input, shape index: {}]   ;;  %s1164_s6 = inlined_call_operand.vmem [shape: f32[1,128], index: 6, kind: input, shape index: {}]   ;;  %s1165_s7 = inlined_call_operand.hbm [shape: f32[40,128], index: 7, kind: output, shape index: {}]  }
   0x1   :  { %13 = vsyncpa [#allocation6], 0 }
   0x2   :  { %14 = vsyncpa [#allocation9], 0 }
   0x3   :  { %15 = vsyncpa [#allocation4], 0  ;;  %s948_s24 = smov [#allocation5]   ;;  %s949_s26 = smov [#allocation2]  }
   0x4   :  { %s33_s25 = sshll.u32 %s948_s24, 4  ;;  %s21_s27 = sshll.u32 %s949_s26, 4  ;;  %s34_s25 = int_to_ptr.vmem [resolvable:$true] %s33_s25  ;;  %s998_s27 = int_to_ptr.vmem [resolvable:$true] %s21_s27 }
   0x5   :  { %s830_s30 = scalar_lea.hbm %s1159_s1, 2048 }
   0x6   :  { %p831_p0 = scmp.ne.s32.totalorder %s1159_s1, %s830_s30  ;;  %p834_p1 = scmp.lt.u32.totalorder %s830_s30, %s1159_s1 }
   0x8   :  { %p836_p2 = pnand %p834_p1, %p831_p0 }
   0xa   :  { %839 = shalt.err (!%p836_p2)
}
   0xb   :  { %s840_s12 = scalar_lea.vmem %s34_s25, 2048  ;;  %p845_p4 = scmp.lt.s32.totalorder %s34_s25, %s34_s25 }
   0xc   :  { %p841_p3 = scmp.ne.s32.totalorder %s34_s25, %s840_s12  ;;  %p846_p5 = scmp.lt.s32.totalorder %s840_s12, %s840_s12 }
   0xe   :  { %p847_p6 = por %p846_p5, %p845_p4 }
  0x10   :  { %p848_p7 = pnand %p847_p6, %p841_p3 }
  0x12   :  { %851 = shalt.err (!%p848_p7)
}
  0x13   :  { %s950_s13 = smov 128   ;;  %s951_s14 = smov 8  }
  0x14   :  { %39 = dma.hbm_to_vmem [thread:$0]  %s1159_s1, 2048, %s34_s25, [#allocation6], %s950_s13, %s950_s13, %s951_s14  }
  0x15   :  { %s852_s19 = scalar_lea.hbm %s1158_s0, 640 }
  0x16   :  { %p853_p8 = scmp.ne.s32.totalorder %s1158_s0, %s852_s19  ;;  %p856_p9 = scmp.lt.u32.totalorder %s852_s19, %s1158_s0 }
  0x18   :  { %p858_p10 = pnand %p856_p9, %p853_p8 }
  0x1a   :  { %861 = shalt.err (!%p858_p10)
}
  0x1b   :  { %s862_s24 = scalar_lea.vmem %s998_s27, 640  ;;  %p867_p12 = scmp.lt.s32.totalorder %s998_s27, %s998_s27 }
  0x1c   :  { %p863_p11 = scmp.ne.s32.totalorder %s998_s27, %s862_s24  ;;  %p868_p13 = scmp.lt.s32.totalorder %s862_s24, %s862_s24 }
  0x1e   :  { %p869_p0 = por %p868_p13, %p867_p12 }
  0x20   :  { %p870_p1 = pnand %p869_p0, %p863_p11 }
  0x22   :  { %873 = shalt.err (!%p870_p1)
}
  0x23   :  { %27 = dma.hbm_to_vmem [thread:$0]  %s1158_s0, 640, %s998_s27, [#allocation3], %s950_s13, %s950_s13, %s951_s14  }
  0x24   :  { %s952_s26 = smov [#allocation7]   ;;  %s953_s29 = smov [#allocation8]  }
  0x25   :  { %s47_s28 = sshll.u32 %s952_s26, 4  ;;  %s61_s30 = sshll.u32 %s953_s29, 4  ;;  %s48_s28 = int_to_ptr.vmem [resolvable:$true] %s47_s28  ;;  %s1035_s30 = int_to_ptr.vmem [resolvable:$true] %s61_s30 }
  0x26   :  { %s874_s10 = scalar_lea.hbm %s1161_s3, 2048 }
  0x27   :  { %p875_p2 = scmp.ne.s32.totalorder %s1161_s3, %s874_s10  ;;  %p878_p3 = scmp.lt.u32.totalorder %s874_s10, %s1161_s3 }
  0x29   :  { %p880_p4 = pnand %p878_p3, %p875_p2 }
  0x2b   :  { %883 = shalt.err (!%p880_p4)
}
  0x2c   :  { %s884_s0 = scalar_lea.vmem %s48_s28, 2048  ;;  %p889_p6 = scmp.lt.s32.totalorder %s48_s28, %s48_s28 }
  0x2d   :  { %p885_p5 = scmp.ne.s32.totalorder %s48_s28, %s884_s0  ;;  %p890_p7 = scmp.lt.s32.totalorder %s884_s0, %s884_s0 }
  0x2f   :  { %p891_p8 = por %p890_p7, %p889_p6 }
  0x31   :  { %p892_p9 = pnand %p891_p8, %p885_p5 }
  0x33   :  { %895 = shalt.err (!%p892_p9)
}
  0x34   :  { %53 = dma.hbm_to_vmem [thread:$0]  %s1161_s3, 2048, %s48_s28, [#allocation6], %s950_s13, %s950_s13, %s951_s14  }
  0x35   :  { %s896_s20 = scalar_lea.hbm %s1163_s5, 2048 }
  0x36   :  { %p897_p10 = scmp.ne.s32.totalorder %s1163_s5, %s896_s20  ;;  %p900_p11 = scmp.lt.u32.totalorder %s896_s20, %s1163_s5 }
  0x38   :  { %p902_p12 = pnand %p900_p11, %p897_p10 }
  0x3a   :  { %905 = shalt.err (!%p902_p12)
}
  0x3b   :  { %s906_s1 = scalar_lea.vmem %s1035_s30, 2048  ;;  %p911_p0 = scmp.lt.s32.totalorder %s1035_s30, %s1035_s30 }
  0x3c   :  { %p907_p13 = scmp.ne.s32.totalorder %s1035_s30, %s906_s1  ;;  %p912_p1 = scmp.lt.s32.totalorder %s906_s1, %s906_s1 }
  0x3e   :  { %p913_p2 = por %p912_p1, %p911_p0 }
  0x40   :  { %p914_p3 = pnand %p913_p2, %p907_p13 }
  0x42   :  { %917 = shalt.err (!%p914_p3)
}
  0x43   :  { %67 = dma.hbm_to_vmem [thread:$0]  %s1163_s5, 2048, %s1035_s30, [#allocation9], %s950_s13, %s950_s13, %s951_s14  }
  0x44   :  { %940 = dma.done.wait [#allocation3], 640  }
  0x45   :  { %941 = vsyncadd [#allocation3], 4294966656 }
  0x46   :  { %942 = dma.done.wait [#allocation6], 4096  }
  0x47   :  { %943 = vsyncadd [#allocation6], 4294963200 }
  0x48   :  { %944 = dma.done.wait [#allocation9], 2048  }
  0x49   :  { %945 = vsyncadd [#allocation9], 4294965248  ;;  %v954_v0 = vmov 0.0|0.0   ;;  %vm955_vm0 = vmmov 0   ;;  %v956_v1 = vmov 0.0   ;;  %v87_v2 = vld [vmem:[#allocation5] sm:$0xff] }
  0x4a   :  { %712 = vmatprep.subr.bf16.mxu0 %v954_v0  ;;  %603 = vmatprep.mubr.msk.f32.mxu0 %vm955_vm0, %v956_v1  ;;  %v88_v3 = vld [vmem:[#allocation5 + $0x8] sm:$0xff]  ;;  %v89_v4 = vld [vmem:[#allocation5 + $0x10] sm:$0xff]  ;;  %v90_v6 = vld [vmem:[#allocation5 + $0x18] sm:$0xff] }
  0x4b   :  { %736 = vmatprep.subr.bf16.mxu1 %v954_v0  ;;  %650 = vmatprep.mubr.msk.f32.mxu1 %vm955_vm0, %v956_v1  ;;  %v713_v5 = vpack.c.bf16 %v88_v3, %v87_v2  ;;  %v716_v7 = vpack.c.bf16 %v90_v6, %v89_v4  ;;  %v91_v8 = vld [vmem:[#allocation5 + $0x20] sm:$0xff]  ;;  %v92_v9 = vld [vmem:[#allocation5 + $0x28] sm:$0xff]  ;;  %v212_v13 = vld [vmem:[#allocation7 + $0x10] sm:$0xff] }
  0x4c   :  { %v719_v10 = vpack.c.bf16 %v92_v9, %v91_v8  ;;  %v210_v11 = vld [vmem:[#allocation7] sm:$0xff]  ;;  %v211_v12 = vld [vmem:[#allocation7 + $0x8] sm:$0xff]  ;;  %v93_v14 = vld [vmem:[#allocation5 + $0x30] sm:$0xff] }
  0x4d   :  { %714 = vmatpush3.bf16.msra.mxu0 %v713_v5  ;;  %v94_v15 = vld [vmem:[#allocation5 + $0x38] sm:$0xff]  ;;  %v737_v16 = vpack.c.bf16 %v211_v12, %v210_v11  ;;  %v214_v20 = vld [vmem:[#allocation7 + $0x20] sm:$0xff]  ;;  %v215_v21 = vld [vmem:[#allocation7 + $0x28] sm:$0xff] }
  0x4e   :  { %715 = vmatprep.subr.bf16.mxu0 %v954_v0  ;;  %v213_v17 = vld [vmem:[#allocation7 + $0x18] sm:$0xff]  ;;  %v722_v19 = vpack.c.bf16 %v94_v15, %v93_v14  ;;  %v95_v22 = vld [vmem:[#allocation5 + $0x40] sm:$0xff]  ;;  %v96_v23 = vld [vmem:[#allocation5 + $0x48] sm:$0xff]  ;;  %v743_v24 = vpack.c.bf16 %v215_v21, %v214_v20 }
  0x4f   :  { %738 = vmatpush3.bf16.msra.mxu1 %v737_v16  ;;  %v740_v18 = vpack.c.bf16 %v213_v17, %v212_v13  ;;  %v725_v25 = vpack.c.bf16 %v96_v23, %v95_v22  ;;  %v216_v26 = vld [vmem:[#allocation7 + $0x30] sm:$0xff]  ;;  %v217_v27 = vld [vmem:[#allocation7 + $0x38] sm:$0xff]  ;;  %v218_v32 = vld [vmem:[#allocation7 + $0x40] sm:$0xff] }
  0x50   :  { %739 = vmatprep.subr.bf16.mxu1 %v954_v0  ;;  %v97_v28 = vld [vmem:[#allocation5 + $0x50] sm:$0xff]  ;;  %v98_v29 = vld [vmem:[#allocation5 + $0x58] sm:$0xff]  ;;  %v746_v30 = vpack.c.bf16 %v217_v27, %v216_v26  ;;  %v219_v33 = vld [vmem:[#allocation7 + $0x48] sm:$0xff] }
  0x51   :  { %717 = vmatpush3.bf16.msra.mxu0 %v716_v7  ;;  %v728_v31 = vpack.c.bf16 %v98_v29, %v97_v28  ;;  %v99_v34 = vld [vmem:[#allocation5 + $0x60] sm:$0xff]  ;;  %v100_v35 = vld [vmem:[#allocation5 + $0x68] sm:$0xff]  ;;  %v749_v36 = vpack.c.bf16 %v219_v33, %v218_v32  ;;  %v220_v38 = vld [vmem:[#allocation7 + $0x50] sm:$0xff] }
  0x52   :  { %718 = vmatprep.subr.bf16.mxu0 %v954_v0  ;;  %v731_v37 = vpack.c.bf16 %v100_v35, %v99_v34  ;;  %v221_v39 = vld [vmem:[#allocation7 + $0x58] sm:$0xff]  ;;  %v101_v40 = vld [vmem:[#allocation5 + $0x70] sm:$0xff]  ;;  %v83_v45 = vld [vmem:[#allocation2 + $0x8] sm:$0xff] }
  0x53   :  { %741 = vmatpush3.bf16.msra.mxu1 %v740_v18  ;;  %v102_v41 = vld [vmem:[#allocation5 + $0x78] sm:$0xff]  ;;  %v752_v42 = vpack.c.bf16 %v221_v39, %v220_v38  ;;  %v84_v46 = vld [vmem:[#allocation2 + $0x10] sm:$0xff]  ;;  %v85_v47 = vld [vmem:[#allocation2 + $0x18] sm:$0xff] }
  0x54   :  { %742 = vmatprep.subr.bf16.mxu1 %v954_v0  ;;  %v734_v43 = vpack.c.bf16 %v102_v41, %v101_v40  ;;  %v82_v44 = vld [vmem:[#allocation2] sm:$0xff]  ;;  %v222_v49 = vld [vmem:[#allocation7 + $0x60] sm:$0xff]  ;;  %v223_v50 = vld [vmem:[#allocation7 + $0x68] sm:$0xff] }
  0x55   :  { %720 = vmatpush3.bf16.msra.mxu0 %v719_v10  ;;  %v86_v48 = vld [vmem:[#allocation2 + $0x20] sm:$0xff]  ;;  %v755_v51 = vpack.c.bf16 %v223_v50, %v222_v49  ;;  %v224_v52 = vld [vmem:[#allocation7 + $0x70] sm:$0xff]  ;;  %v333_v55 = vld [vmem:[#allocation8] sm:$0xff] }
  0x56   :  { %721 = vmatprep.subr.bf16.mxu0 %v954_v0  ;;  %v225_v53 = vld [vmem:[#allocation7 + $0x78] sm:$0xff]  ;;  %v334_v56 = vld [vmem:[#allocation8 + $0x8] sm:$0xff]  ;;  %v335_v57 = vld [vmem:[#allocation8 + $0x10] sm:$0xff] }
  0x57   :  { %744 = vmatpush3.bf16.msra.mxu1 %v743_v24  ;;  %v758_v54 = vpack.c.bf16 %v225_v53, %v224_v52  ;;  %v761_v58 = vpack.c.bf16 %v334_v56, %v333_v55  ;;  %v336_v59 = vld [vmem:[#allocation8 + $0x18] sm:$0xff]  ;;  %v337_v61 = vld [vmem:[#allocation8 + $0x20] sm:$0xff]  ;;  %v338_v62 = vld [vmem:[#allocation8 + $0x28] sm:$0xff] }
  0x58   :  { %745 = vmatprep.subr.bf16.mxu1 %v954_v0  ;;  %v764_v60 = vpack.c.bf16 %v336_v59, %v335_v57  ;;  %v767_v63 = vpack.c.bf16 %v338_v62, %v337_v61  ;;  %v339_v2 = vld [vmem:[#allocation8 + $0x30] sm:$0xff]  ;;  %v340_v3 = vld [vmem:[#allocation8 + $0x38] sm:$0xff]  ;;  %v341_v5 = vld [vmem:[#allocation8 + $0x40] sm:$0xff] }
  0x59   :  { %723 = vmatpush3.bf16.msra.mxu0 %v722_v19  ;;  %v770_v4 = vpack.c.bf16 %v340_v3, %v339_v2  ;;  %v342_v6 = vld [vmem:[#allocation8 + $0x48] sm:$0xff]  ;;  %v343_v8 = vld [vmem:[#allocation8 + $0x50] sm:$0xff]  ;;  %v344_v9 = vld [vmem:[#allocation8 + $0x58] sm:$0xff] }
  0x5a   :  { %724 = vmatprep.subr.bf16.mxu0 %v954_v0  ;;  %v773_v7 = vpack.c.bf16 %v342_v6, %v341_v5  ;;  %v776_v10 = vpack.c.bf16 %v344_v9, %v343_v8  ;;  %v500_v11 = vld [vmem:[%s1160_s2] ss:$0 sm:$0xff]  ;;  %v346_v38 = vld [vmem:[#allocation8 + $0x68] sm:$0xff]  ;;  %v347_v40 = vld [vmem:[#allocation8 + $0x70] sm:$0xff] }
  0x5b   :  { %747 = vmatpush3.bf16.msra.mxu1 %v746_v30  ;;  %v348_v41 = vld [vmem:[#allocation8 + $0x78] sm:$0xff] }
  0x5c   :  { %748 = vmatprep.subr.bf16.mxu1 %v954_v0  ;;  %v502_v6 = vld [vmem:[%s1164_s6] ss:$0 sm:$0xff]  ;;  %s957_s6 = smov [#allocation10]  }
  0x5d   :  { %726 = vmatpush3.bf16.msra.mxu0 %v725_v25  ;;  %s486_s30 = sshll.u32 %s957_s6, 4  ;;  %s487_s30 = int_to_ptr.vmem [resolvable:$true] %s486_s30 }
  0x5e   :  { %727 = vmatprep.subr.bf16.mxu0 %v954_v0  ;;  %s918_s8 = scalar_lea.vmem %s487_s30, 640  ;;  %p923_p5 = scmp.lt.s32.totalorder %s487_s30, %s487_s30 }
  0x5f   :  { %750 = vmatpush3.bf16.msra.mxu1 %v749_v36  ;;  %p919_p4 = scmp.ne.s32.totalorder %s487_s30, %s918_s8  ;;  %p924_p6 = scmp.lt.s32.totalorder %s918_s8, %s918_s8 }
  0x60   :  { %751 = vmatprep.subr.bf16.mxu1 %v954_v0 }
  0x61   :  { %729 = vmatpush3.bf16.msra.mxu0 %v728_v31  ;;  %p925_p7 = por %p924_p6, %p923_p5 }
  0x62   :  { %730 = vmatprep.subr.bf16.mxu0 %v954_v0 }
  0x63   :  { %753 = vmatpush3.bf16.msra.mxu1 %v752_v42  ;;  %v782_v42 = vpack.c.bf16 %v348_v41, %v347_v40  ;;  %p926_p8 = pnand %p925_p7, %p919_p4 }
  0x64   :  { %754 = vmatprep.subr.bf16.mxu1 %v954_v0 }
  0x65   :  { %732 = vmatpush3.bf16.msra.mxu0 %v731_v37  ;;  %v345_v37 = vld [vmem:[#allocation8 + $0x60] sm:$0xff] }
  0x66   :  { %733 = vmatprep.subr.bf16.mxu0 %v954_v0  ;;  %v779_v39 = vpack.c.bf16 %v346_v38, %v345_v37 }
  0x67   :  { %756 = vmatpush3.bf16.msra.mxu1 %v755_v51 }
  0x68   :  { %757 = vmatprep.subr.bf16.mxu1 %v954_v0 }
  0x69   :  { %735 = vmatpush3.bf16.msra.mxu0 %v734_v43  ;;  %v501_v43 = vld [vmem:[%s1162_s4] ss:$0 sm:$0xff] }
  0x6a   :  { %760 = vmatprep.subr.bf16.mxu0 %v954_v0 }
  0x6b   :  { %759 = vmatpush3.bf16.msra.mxu1 %v758_v54 }
  0x6c   :  { %604 = vmatmul.mubr.f32.vlgmr.msra.gmra.mrb[0].mxu0 %v82_v44  ;;  %784 = vmatprep.subr.bf16.mxu1 %v954_v0 }
  0x6d   :  { %606 = vmatprep.mubr.msk.f32.mxu0 %vm955_vm0, %v956_v1  ;;  %762 = vmatpush3.bf16.msra.mxu0 %v761_v58 }
  0x6e   :  { %763 = vmatprep.subr.bf16.mxu0 %v954_v0 }
  0x70   :  { %607 = vmatmul.mubr.f32.gmra.mrb[2].mxu0 %v83_v45 }
  0x71   :  { %609 = vmatprep.mubr.msk.f32.mxu0 %vm955_vm0, %v956_v1  ;;  %765 = vmatpush3.bf16.msra.mxu0 %v764_v60 }
  0x72   :  { %766 = vmatprep.subr.bf16.mxu0 %v954_v0 }
  0x74   :  { %610 = vmatmul.mubr.f32.gmra.mrb[4].mxu0 %v84_v46 }
  0x75   :  { %612 = vmatprep.mubr.msk.f32.mxu0 %vm955_vm0, %v956_v1  ;;  %768 = vmatpush3.bf16.msra.mxu0 %v767_v63 }
  0x76   :  { %769 = vmatprep.subr.bf16.mxu0 %v954_v0 }
  0x78   :  { %613 = vmatmul.mubr.f32.gmra.mrb[6].mxu0 %v85_v47 }
  0x79   :  { %615 = vmatprep.mubr.msk.f32.mxu0 %vm955_vm0, %v956_v1  ;;  %771 = vmatpush3.bf16.msra.mxu0 %v770_v4 }
  0x7a   :  { %772 = vmatprep.subr.bf16.mxu0 %v954_v0 }
  0x7c   :  { %616 = vmatmul.mubr.f32.gmra.mrb[8].mxu0 %v86_v48 }
  0x7d   :  { %697 = vmatprep.mubr.msk.f32.mxu0 %vm955_vm0, %v956_v1  ;;  %774 = vmatpush3.bf16.msra.mxu0 %v773_v7 }
  0x7e   :  { %775 = vmatprep.subr.bf16.mxu0 %v954_v0 }
  0x81   :  { %777 = vmatpush3.bf16.msra.mxu0 %v776_v10 }
  0x82   :  { %778 = vmatprep.subr.bf16.mxu0 %v954_v0 }
  0x85   :  { %780 = vmatpush3.bf16.msra.mxu0 %v779_v39 }
  0x86   :  { %781 = vmatprep.subr.bf16.mxu0 %v954_v0 }
  0x89   :  { %783 = vmatpush3.bf16.msra.mxu0 %v782_v42 }
 0x13f   :  { %v176_v12 = vpop.f32.mrb[0].mxu0 }
 0x140   :  { %v177_v13 = vadd.f32 %v500_v11, %v176_v12  ;;  %v605_v14 = vpop.f32.mrb[1].mxu0 }
 0x142   :  { %v200_v15 = vmul.f32 0.2, %v177_v13 }
 0x143   :  { %v181_v16 = vpop.f32.mrb[2].mxu0 }
 0x144   :  { %v205_v17 = vmax.f32 %v177_v13, %v200_v15  ;;  %v182_v18 = vadd.f32 %v500_v11, %v181_v16  ;;  %v608_v19 = vpop.f32.mrb[3].mxu0 }
 0x146   :  { %v201_v20 = vmul.f32 0.2, %v182_v18  ;;  %651 = vmatmul.mubr.f32.vlgmr.msra.gmra.mrb[0].mxu1 %v205_v17 }
 0x147   :  { %v186_v21 = vpop.f32.mrb[4].mxu0  ;;  %653 = vmatprep.mubr.msk.f32.mxu1 %vm955_vm0, %v956_v1  ;;  %792 = vmatpush3.bf16.msra.mxu1 %v761_v58 }
 0x148   :  { %v206_v22 = vmax.f32 %v182_v18, %v201_v20  ;;  %v187_v23 = vadd.f32 %v500_v11, %v186_v21  ;;  %v611_v24 = vpop.f32.mrb[5].mxu0  ;;  %785 = vmatprep.subr.bf16.mxu1 %v954_v0 }
 0x14a   :  { %v202_v25 = vmul.f32 0.2, %v187_v23  ;;  %654 = vmatmul.mubr.f32.gmra.mrb[2].mxu1 %v206_v22 }
 0x14b   :  { %v191_v26 = vpop.f32.mrb[6].mxu0  ;;  %656 = vmatprep.mubr.msk.f32.mxu1 %vm955_vm0, %v956_v1  ;;  %793 = vmatpush3.bf16.msra.mxu1 %v764_v60 }
 0x14c   :  { %v207_v27 = vmax.f32 %v187_v23, %v202_v25  ;;  %v192_v28 = vadd.f32 %v500_v11, %v191_v26  ;;  %v614_v29 = vpop.f32.mrb[7].mxu0  ;;  %786 = vmatprep.subr.bf16.mxu1 %v954_v0 }
 0x14e   :  { %v203_v30 = vmul.f32 0.2, %v192_v28  ;;  %657 = vmatmul.mubr.f32.gmra.mrb[4].mxu1 %v207_v27 }
 0x14f   :  { %v196_v31 = vpop.f32.mrb[8].mxu0  ;;  %659 = vmatprep.mubr.msk.f32.mxu1 %vm955_vm0, %v956_v1  ;;  %794 = vmatpush3.bf16.msra.mxu1 %v767_v63 }
 0x150   :  { %v208_v32 = vmax.f32 %v192_v28, %v203_v30  ;;  %v197_v33 = vadd.f32 %v500_v11, %v196_v31  ;;  %v617_v34 = vpop.f32.mrb[9].mxu0  ;;  %787 = vmatprep.subr.bf16.mxu1 %v954_v0 }
 0x152   :  { %v204_v35 = vmul.f32 0.2, %v197_v33  ;;  %660 = vmatmul.mubr.f32.gmra.mrb[6].mxu1 %v208_v32 }
 0x153   :  { %662 = vmatprep.mubr.msk.f32.mxu1 %vm955_vm0, %v956_v1  ;;  %795 = vmatpush3.bf16.msra.mxu1 %v770_v4 }
 0x154   :  { %v209_v36 = vmax.f32 %v197_v33, %v204_v35  ;;  %788 = vmatprep.subr.bf16.mxu1 %v954_v0 }
 0x156   :  { %663 = vmatmul.mubr.f32.gmra.mrb[8].mxu1 %v209_v36 }
 0x157   :  { %796 = vmatpush3.bf16.msra.mxu1 %v773_v7  ;;  %706 = vmatprep.mubr.msk.f32.mxu1 %vm955_vm0, %v956_v1 }
 0x158   :  { %789 = vmatprep.subr.bf16.mxu1 %v954_v0 }
 0x15b   :  { %797 = vmatpush3.bf16.msra.mxu1 %v776_v10 }
 0x15c   :  { %790 = vmatprep.subr.bf16.mxu1 %v954_v0 }
 0x15f   :  { %798 = vmatpush3.bf16.msra.mxu1 %v779_v39 }
 0x160   :  { %791 = vmatprep.subr.bf16.mxu1 %v954_v0 }
 0x163   :  { %799 = vmatpush3.bf16.msra.mxu1 %v782_v42 }
 0x219   :  { %v299_v44 = vpop.f32.mrb[0].mxu1 }
 0x21a   :  { %v300_v45 = vadd.f32 %v501_v43, %v299_v44  ;;  %v652_v46 = vpop.f32.mrb[1].mxu1 }
 0x21c   :  { %v323_v47 = vmul.f32 0.2, %v300_v45 }
 0x21d   :  { %v304_v48 = vpop.f32.mrb[2].mxu1 }
 0x21e   :  { %v328_v49 = vmax.f32 %v300_v45, %v323_v47  ;;  %v305_v50 = vadd.f32 %v501_v43, %v304_v48  ;;  %v655_v51 = vpop.f32.mrb[3].mxu1 }
 0x220   :  { %v324_v52 = vmul.f32 0.2, %v305_v50  ;;  %698 = vmatmul.mubr.f32.vlgmr.msra.gmra.mrb[10].mxu0 %v328_v49 }
 0x221   :  { %v309_v53 = vpop.f32.mrb[4].mxu1  ;;  %700 = vmatprep.mubr.msk.f32.mxu0 %vm955_vm0, %v956_v1 }
 0x222   :  { %v329_v0 = vmax.f32 %v305_v50, %v324_v52  ;;  %v310_v54 = vadd.f32 %v501_v43, %v309_v53  ;;  %v658_v55 = vpop.f32.mrb[5].mxu1 }
 0x224   :  { %v325_v56 = vmul.f32 0.2, %v310_v54  ;;  %701 = vmatmul.mubr.f32.gmra.mrb[12].mxu0 %v329_v0 }
 0x225   :  { %v314_v57 = vpop.f32.mrb[6].mxu1  ;;  %703 = vmatprep.mubr.msk.f32.mxu0 %vm955_vm0, %v956_v1 }
 0x226   :  { %v330_v58 = vmax.f32 %v310_v54, %v325_v56  ;;  %v315_v59 = vadd.f32 %v501_v43, %v314_v57  ;;  %v661_v60 = vpop.f32.mrb[7].mxu1 }
 0x228   :  { %v326_v61 = vmul.f32 0.2, %v315_v59  ;;  %704 = vmatmul.mubr.f32.gmra.mrb[14].mxu0 %v330_v58 }
 0x229   :  { %v319_v62 = vpop.f32.mrb[8].mxu1 }
 0x22a   :  { %v331_v63 = vmax.f32 %v315_v59, %v326_v61  ;;  %v320_v2 = vadd.f32 %v501_v43, %v319_v62  ;;  %v664_v3 = vpop.f32.mrb[9].mxu1 }
 0x22c   :  { %v327_v4 = vmul.f32 0.2, %v320_v2  ;;  %707 = vmatmul.mubr.f32.vlgmr.msra.gmra.mrb[10].mxu1 %v331_v63 }
 0x22d   :  { %709 = vmatprep.mubr.msk.f32.mxu1 %vm955_vm0, %v956_v1 }
 0x22e   :  { %v332_v5 = vmax.f32 %v320_v2, %v327_v4 }
 0x230   :  { %710 = vmatmul.mubr.f32.gmra.mrb[12].mxu1 %v332_v5 }
 0x2f3   :  { %v422_v7 = vpop.f32.mrb[10].mxu0 }
 0x2f4   :  { %v423_v8 = vadd.f32 %v502_v6, %v422_v7  ;;  %v699_v9 = vpop.f32.mrb[11].mxu0 }
 0x2f6   :  { %v503_v10 = vmul.f32 -1.442695, %v423_v8 }
 0x2f7   :  { %v427_v11 = vpop.f32.mrb[12].mxu0 }
 0x2f8   :  { %810 = vpow2.f32 %v503_v10  ;;  %v428_v12 = vadd.f32 %v502_v6, %v427_v11  ;;  %v702_v13 = vpop.f32.mrb[13].mxu0 }
 0x2fa   :  { %v504_v14 = vmul.f32 -1.442695, %v428_v12 }
 0x2fb   :  { %v432_v15 = vpop.f32.mrb[14].mxu0 }
 0x2fc   :  { %812 = vpow2.f32 %v504_v14  ;;  %v433_v16 = vadd.f32 %v502_v6, %v432_v15  ;;  %v705_v17 = vpop.f32.mrb[15].mxu0 }
 0x2fe   :  { %v505_v1 = vmul.f32 -1.442695, %v433_v16 }
 0x2ff   :  { %v437_v18 = vpop.f32.mrb[10].mxu1 }
 0x300   :  { %814 = vpow2.f32 %v505_v1  ;;  %v438_v19 = vadd.f32 %v502_v6, %v437_v18  ;;  %v708_v20 = vpop.f32.mrb[11].mxu1 }
 0x302   :  { %v811_v21 = vpop.eup %810  ;;  %v506_v22 = vmul.f32 -1.442695, %v438_v19 }
 0x303   :  { %v461_v23 = vadd.f32 1.0, %v811_v21  ;;  %v442_v24 = vpop.f32.mrb[12].mxu1 }
 0x304   :  { %816 = vpow2.f32 %v506_v22  ;;  %v443_v25 = vadd.f32 %v502_v6, %v442_v24  ;;  %v711_v26 = vpop.f32.mrb[13].mxu1 }
 0x305   :  { %818 = vrcp.f32 %v461_v23 }
 0x306   :  { %v813_v27 = vpop.eup %812  ;;  %v507_v28 = vmul.f32 -1.442695, %v443_v25 }
 0x307   :  { %v462_v29 = vadd.f32 1.0, %v813_v27 }
 0x308   :  { %820 = vpow2.f32 %v507_v28 }
 0x309   :  { %822 = vrcp.f32 %v462_v29 }
 0x30a   :  { %v815_v30 = vpop.eup %814 }
 0x30b   :  { %v463_v31 = vadd.f32 1.0, %v815_v30 }
 0x30d   :  { %824 = vrcp.f32 %v463_v31 }
 0x30e   :  { %v817_v32 = vpop.eup %816 }
 0x30f   :  { %v819_v33 = vpop.eup %818  ;;  %v464_v34 = vadd.f32 1.0, %v817_v32 }
 0x310   :  { %476 = vst [vmem:[#allocation10] sm:$0xff] %v819_v33 }
 0x311   :  { %826 = vrcp.f32 %v464_v34 }
 0x312   :  { %v821_v35 = vpop.eup %820 }
 0x313   :  { %v823_v36 = vpop.eup %822  ;;  %v465_v37 = vadd.f32 1.0, %v821_v35 }
 0x314   :  { %477 = vst [vmem:[#allocation10 + $0x8] sm:$0xff] %v823_v36 }
 0x315   :  { %828 = vrcp.f32 %v465_v37 }
 0x317   :  { %v825_v38 = vpop.eup %824 }
 0x318   :  { %478 = vst [vmem:[#allocation10 + $0x10] sm:$0xff] %v825_v38 }
 0x31b   :  { %v827_v39 = vpop.eup %826 }
 0x31c   :  { %479 = vst [vmem:[#allocation10 + $0x18] sm:$0xff] %v827_v39 }
 0x31f   :  { %v829_v40 = vpop.eup %828 }
 0x320   :  { %480 = vst [vmem:[#allocation10 + $0x20] sm:$0xff] %v829_v40 }
 0x321   :  { %929 = shalt.err (!%p926_p8)
}
 0x322   :  { %s930_s11 = scalar_lea.hbm %s1165_s7, 640 }
 0x323   :  { %p931_p9 = scmp.ne.s32.totalorder %s1165_s7, %s930_s11  ;;  %p934_p10 = scmp.lt.u32.totalorder %s930_s11, %s1165_s7 }
 0x325   :  { %p936_p11 = pnand %p934_p10, %p931_p9 }
 0x327   :  { %939 = shalt.err (!%p936_p11)
}
 0x328   :  { %492 = dma.vmem_to_hbm [thread:$0]  %s487_s30, 640, %s1165_s7, [#allocation4], %s950_s13, %s950_s13, %s951_s14  }
 0x329   :  { %946 = dma.done.wait [#allocation4], 640  }
 0x32a   :  { %947 = vsyncadd [#allocation4], 4294966656 }
 0x32b   :  { %496 = vsyncpa [#allocation3], 1 }
 0x32c   :  { %497 = vsyncpa [#allocation6], 1 }
 0x32d   :  { %498 = vsyncpa [#allocation9], 1 }
 0x32e   :  { %499 = vsyncpa [#allocation4], 1 }

</bundles_post_ra>
